<compile_context>
chip_gen: v7x
topology: tpu7x:2x2x1
jax: 0.10.0
libtpu: 0.0.40
codegen_flags: <defaults>
</compile_context>

<pallas_src>
import functools

import jax
import jax.numpy as jnp
from jax.experimental import pallas as pl
from jax.experimental.pallas import tpu as pltpu

IN_FEATURES = 1024
HIDDEN = 128
LANE = 128
SUBLANE = 8


def _round_up(n, m):
    return ((n + m - 1) // m) * m


def _device_kind():
    try:
        return jax.devices()[0].device_kind.lower()
    except Exception:
        return ""


def _default_matmul_dtype():
    kind = _device_kind()
    # v5e emulates f32 matmul as multiple bf16 MXU passes; bf16 inputs (with f32
    # accumulation) keep the kernel cleanly HBM-bound there.  v5p/v6e/v7x: f32.
    if ("v5 lite" in kind) or ("v5e" in kind) or ("v5lite" in kind):
        return jnp.bfloat16
    return jnp.float32


def _default_block_b():
    kind = _device_kind()
    # v6e: 128 MiB physical VMEM -> a 2048-row tile halves per-step overhead on
    # large batches (~19 MiB footprint, under the 32 MiB limit set below).
    # v7x (64 MiB VMEM, 2 TCs) and v5e keep 1024.
    if "v6" in kind:
        return 2048
    return 1024


def _mlp_kernel(x_ref, w1_ref, b1_ref, w2_ref, b2_ref, o_ref, *, matmul_dtype):
    # fc1 + ReLU (MXU matmul, f32 accumulation, VPU elementwise).
    x = x_ref[...].astype(matmul_dtype)
    w1 = w1_ref[...].astype(matmul_dtype)
    h = jnp.dot(x, w1, preferred_element_type=jnp.float32)
    h = jnp.maximum(h + b1_ref[...], 0.0)          # (TB,128) + (1,128) broadcast
    # fc2 into a lane-dense (TB, C_pad) output slab.
    w2 = w2_ref[...].astype(matmul_dtype)
    y = jnp.dot(h.astype(matmul_dtype), w2, preferred_element_type=jnp.float32)
    o_ref[...] = (y + b2_ref[...]).astype(o_ref.dtype)


@functools.partial(jax.jit, static_argnames=("block_b", "matmul_dtype"))
def _forward(x, w1, b1, w2, b2, *, block_b, matmul_dtype):
    B = x.shape[0]
    C = w2.shape[1]

    # Lane-dense output: pad the class dimension to a multiple of 128.
    C_pad = max(LANE, _round_up(C, LANE))
    w2_p = jnp.zeros((HIDDEN, C_pad), w2.dtype).at[:, :C].set(w2)
    b2_p = jnp.zeros((1, C_pad), b2.dtype).at[:, :C].set(b2)
    b1_2d = b1.reshape(1, HIDDEN)

    # Pad B only to the sublane multiple (8); the partial edge block when B_pad
    # is not a multiple of TB is handled by Pallas (tail rows are discarded).
    B_pad = _round_up(B, SUBLANE)
    if B_pad != B:
        x = jnp.pad(x, ((0, B_pad - B), (0, 0)))

    # Adaptive batch tile: aim for >=4 grid steps so the BlockSpec pipeline
    # overlaps input DMA / compute / writeback (and both v7x TensorCores get
    # several tiles), while keeping >=256 rows/step to amortize the ~0.35 us
    # per-grid-step overhead.
    TB = min(block_b, max(256, _round_up(pl.cdiv(B_pad, 4), SUBLANE)))
    TB = min(TB, B_pad)
    grid = (pl.cdiv(B_pad, TB),)

    kernel = functools.partial(_mlp_kernel, matmul_dtype=matmul_dtype)

    out = pl.pallas_call(
        kernel,
        out_shape=jax.ShapeDtypeStruct((B_pad, C_pad), x.dtype),
        grid_spec=pltpu.PrefetchScalarGridSpec(
            num_scalar_prefetch=0,
            grid=grid,
            in_specs=[
                # x streams tile-by-tile over the batch axis.
                pl.BlockSpec((TB, IN_FEATURES), lambda i: (i, 0)),
                # Weights / biases: same block every step -> VMEM-resident.
                pl.BlockSpec((IN_FEATURES, HIDDEN), lambda i: (0, 0)),
                pl.BlockSpec((1, HIDDEN), lambda i: (0, 0)),
                pl.BlockSpec((HIDDEN, C_pad), lambda i: (0, 0)),
                pl.BlockSpec((1, C_pad), lambda i: (0, 0)),
            ],
            out_specs=pl.BlockSpec((TB, C_pad), lambda i: (i, 0)),
        ),
        compiler_params=pltpu.CompilerParams(
            dimension_semantics=("parallel",),
            # Explicit scoped-VMEM limit so TB=2048 (v6e) never trips the 16 MiB
            # v5e default if constants are reused across chips.
            vmem_limit_bytes=32 * 1024 * 1024,
        ),
    )(x, w1, b1_2d, w2_p, b2_p)

    # Under jit this slice fuses with the consumer instead of an extra pass.
    return out[:B, :C]


def simple_signal_net(x, w1, b1, w2, b2, *, block_b=None, matmul_dtype=None):
    """x: (B, 1024) f32; w1: (1024,128); b1: (128,); w2: (128,C); b2: (C,)."""
    if block_b is None:
        block_b = _default_block_b()
    if matmul_dtype is None:
        matmul_dtype = _default_matmul_dtype()
    return _forward(x, w1, b1, w2, b2, block_b=block_b, matmul_dtype=matmul_dtype)


def _reference(x, w1, b1, w2, b2):
    h = jnp.maximum(x @ w1 + b1, 0.0)
    return h @ w2 + b2


if __name__ == "__main__":
    num_classes = 10
    batch = 4

    key = jax.random.PRNGKey(0)
    kx, kw1, kb1, kw2, kb2 = jax.random.split(key, 5)

    # Deterministic parameter init (synthetic; PyTorch-like uniform scale).
    x = jax.random.normal(kx, (batch, IN_FEATURES), dtype=jnp.float32)
    lim1 = IN_FEATURES ** -0.5
    w1 = jax.random.uniform(kw1, (IN_FEATURES, HIDDEN), jnp.float32, -lim1, lim1)
    b1 = jax.random.uniform(kb1, (HIDDEN,), jnp.float32, -lim1, lim1)
    lim2 = HIDDEN ** -0.5
    w2 = jax.random.uniform(kw2, (HIDDEN, num_classes), jnp.float32, -lim2, lim2)
    b2 = jax.random.uniform(kb2, (num_classes,), jnp.float32, -lim2, lim2)

    # Tolerance depends on whether this chip uses the in-kernel bf16 matmul path.
    tol = 1e-4 if _default_matmul_dtype() == jnp.float32 else 2e-2

    out = jax.block_until_ready(simple_signal_net(x, w1, b1, w2, b2))
    ref = _reference(x, w1, b1, w2, b2)
    assert out.shape == (batch, num_classes)
    assert jnp.allclose(out, ref, atol=tol, rtol=tol), "mismatch (small batch)"

    # Ragged multi-tile batch: exercises grid > 1 and the partial edge block.
    xb = jax.random.normal(kx, (520, IN_FEATURES), dtype=jnp.float32)
    outb = jax.block_until_ready(simple_signal_net(xb, w1, b1, w2, b2))
    refb = _reference(xb, w1, b1, w2, b2)
    assert outb.shape == (520, num_classes)
    assert jnp.allclose(outb, refb, atol=tol, rtol=tol), "mismatch (ragged batch)"

    print("KERNEL_OK")
</pallas_src>

<mosaic_0001>
module attributes {stable_mosaic.version = 11 : i64} {
  func.func @_mlp_kernel(%arg0: i32, %arg1: memref<8x1024xf32, #tpu.memory_space<vmem>>, %arg2: memref<1024x128xf32, #tpu.memory_space<vmem>>, %arg3: memref<1x128xf32, #tpu.memory_space<vmem>>, %arg4: memref<128x128xf32, #tpu.memory_space<vmem>>, %arg5: memref<1x128xf32, #tpu.memory_space<vmem>>, %arg6: memref<8x128xf32, #tpu.memory_space<vmem>>) attributes {dimension_semantics = [#tpu.dimension_semantics<parallel>], iteration_bounds = array<i64: 1>, scalar_prefetch = 0 : i64, scratch_operands = 0 : i64, tpu.core_type = #tpu.core_type<tc>, window_params = [{transform_indices = @transform_0, window_bounds = array<i64: 8, 1024>}, {pipeline_mode = #tpu.pipeline_mode<synchronous>, transform_indices = @transform_1, window_bounds = array<i64: 1024, 128>}, {pipeline_mode = #tpu.pipeline_mode<synchronous>, transform_indices = @transform_2, window_bounds = array<i64: 1, 128>}, {pipeline_mode = #tpu.pipeline_mode<synchronous>, transform_indices = @transform_3, window_bounds = array<i64: 128, 128>}, {pipeline_mode = #tpu.pipeline_mode<synchronous>, transform_indices = @transform_4, window_bounds = array<i64: 1, 128>}, {transform_indices = @transform_5, window_bounds = array<i64: 8, 128>}]} {
    %c0 = arith.constant 0 : index
    %c0_0 = arith.constant 0 : index
    %0 = vector.load %arg1[%c0, %c0_0] : memref<8x1024xf32, #tpu.memory_space<vmem>>, vector<8x1024xf32>
    %c0_1 = arith.constant 0 : index
    %c0_2 = arith.constant 0 : index
    %1 = vector.load %arg2[%c0_1, %c0_2] : memref<1024x128xf32, #tpu.memory_space<vmem>>, vector<1024x128xf32>
    %cst = arith.constant dense<0.000000e+00> : vector<8x128xf32>
    %2 = tpu.matmul %0, %1, %cst {dimension_numbers = #tpu.dot_dimension_numbers<[1], [0], [0], [1], [0, 0, 1, 1], [], []>} : vector<8x1024xf32>, vector<1024x128xf32>, vector<8x128xf32> -> vector<8x128xf32>
    %c0_3 = arith.constant 0 : index
    %c0_4 = arith.constant 0 : index
    %3 = vector.load %arg3[%c0_3, %c0_4] : memref<1x128xf32, #tpu.memory_space<vmem>>, vector<1x128xf32>
    %4 = vector.broadcast %3 : vector<1x128xf32> to vector<8x128xf32>
    %5 = arith.addf %2, %4 : vector<8x128xf32>
    %cst_5 = arith.constant 0.000000e+00 : f32
    %6 = vector.broadcast %cst_5 : f32 to vector<8x128xf32>
    %7 = arith.maximumf %5, %6 : vector<8x128xf32>
    %c0_6 = arith.constant 0 : index
    %c0_7 = arith.constant 0 : index
    %8 = vector.load %arg4[%c0_6, %c0_7] : memref<128x128xf32, #tpu.memory_space<vmem>>, vector<128x128xf32>
    %cst_8 = arith.constant dense<0.000000e+00> : vector<8x128xf32>
    %9 = tpu.matmul %7, %8, %cst_8 {dimension_numbers = #tpu.dot_dimension_numbers<[1], [0], [0], [1], [0, 0, 1, 1], [], []>} : vector<8x128xf32>, vector<128x128xf32>, vector<8x128xf32> -> vector<8x128xf32>
    %c0_9 = arith.constant 0 : index
    %c0_10 = arith.constant 0 : index
    %10 = vector.load %arg5[%c0_9, %c0_10] : memref<1x128xf32, #tpu.memory_space<vmem>>, vector<1x128xf32>
    %11 = vector.broadcast %10 : vector<1x128xf32> to vector<8x128xf32>
    %12 = arith.addf %9, %11 : vector<8x128xf32>
    %c0_11 = arith.constant 0 : index
    %c0_12 = arith.constant 0 : index
    %13 = vector.load %arg6[%c0_11, %c0_12] : memref<8x128xf32, #tpu.memory_space<vmem>>, vector<8x128xf32>
    tpu.vector_store %arg6[%c0_11, %c0_12], %12 {strides = array<i32>} : memref<8x128xf32, #tpu.memory_space<vmem>>, vector<8x128xf32>,
    return
  }
  func.func @transform_0(%arg0: i32) -> (i32, i32) {
    %c0_i32 = arith.constant 0 : i32
    %c0_i32_0 = arith.constant 0 : i32
    return %arg0, %c0_i32 : i32, i32
  }
  func.func @transform_1(%arg0: i32) -> (i32, i32) {
    %c0_i32 = arith.constant 0 : i32
    %c0_i32_0 = arith.constant 0 : i32
    %c0_i32_1 = arith.constant 0 : i32
    return %c0_i32, %c0_i32_0 : i32, i32
  }
  func.func @transform_2(%arg0: i32) -> (i32, i32) {
    %c0_i32 = arith.constant 0 : i32
    %c0_i32_0 = arith.constant 0 : i32
    %c0_i32_1 = arith.constant 0 : i32
    return %c0_i32, %c0_i32_0 : i32, i32
  }
  func.func @transform_3(%arg0: i32) -> (i32, i32) {
    %c0_i32 = arith.constant 0 : i32
    %c0_i32_0 = arith.constant 0 : i32
    %c0_i32_1 = arith.constant 0 : i32
    return %c0_i32, %c0_i32_0 : i32, i32
  }
  func.func @transform_4(%arg0: i32) -> (i32, i32) {
    %c0_i32 = arith.constant 0 : i32
    %c0_i32_0 = arith.constant 0 : i32
    %c0_i32_1 = arith.constant 0 : i32
    return %c0_i32, %c0_i32_0 : i32, i32
  }
  func.func @transform_5(%arg0: i32) -> (i32, i32) {
    %c0_i32 = arith.constant 0 : i32
    %c0_i32_0 = arith.constant 0 : i32
    return %arg0, %c0_i32 : i32, i32
  }
}

</mosaic_0001>

<bundles_post_ra>
// kernel: _forward.1
= control target key start
LH: loop header
LB: loop body
LE: loop exit
PB: predicated region body
PF: predicated region fallthrough
CT: control target
= control target key end

     0   :  { %10 = vsyncpa [#allocation3], 0  ;;  %s933_s18 = smov [#allocation2]   ;;  %s1062_s0 = inlined_call_operand.vmem [shape: f32[8,1024], index: 0, kind: input, shape index: {}]   ;;  %s1063_s1 = inlined_call_operand.hbm [shape: f32[1024,128], index: 1, kind: input, shape index: {}]   ;;  %s1064_s2 = inlined_call_operand.vmem [shape: f32[1,128], index: 2, kind: input, shape index: {}]   ;;  %s1065_s3 = inlined_call_operand.vmem [shape: f32[128,128], index: 3, kind: input, shape index: {}]   ;;  %s1066_s4 = inlined_call_operand.vmem [shape: f32[1,128], index: 4, kind: input, shape index: {}]   ;;  %s1067_s5 = inlined_call_operand.vmem [shape: f32[8,128], index: 5, kind: output, shape index: {}]  }
   0x1   :  { %s18_s19 = sshll.u32 %s933_s18, 4  ;;  %s909_s22 = scalar_lea.hbm %s1063_s1, 16384  ;;  %s19_s19 = int_to_ptr.vmem [resolvable:$true] %s18_s19 }
   0x2   :  { %p910_p0 = scmp.ne.s32.totalorder %s1063_s1, %s909_s22  ;;  %p913_p1 = scmp.lt.u32.totalorder %s909_s22, %s1063_s1 }
   0x4   :  { %p915_p2 = pnand %p913_p1, %p910_p0 }
   0x6   :  { %918 = shalt.err (!%p915_p2)
}
   0x7   :  { %s919_s27 = scalar_lea.vmem %s19_s19, 16384  ;;  %p924_p4 = scmp.lt.s32.totalorder %s19_s19, %s19_s19 }
   0x8   :  { %p920_p3 = scmp.ne.s32.totalorder %s19_s19, %s919_s27  ;;  %p925_p5 = scmp.lt.s32.totalorder %s919_s27, %s919_s27 }
   0xa   :  { %p926_p6 = por %p925_p5, %p924_p4 }
   0xc   :  { %p927_p7 = pnand %p926_p6, %p920_p3 }
   0xe   :  { %930 = shalt.err (!%p927_p7)
}
   0xf   :  { %s934_s28 = smov 128   ;;  %s935_s29 = smov 8  }
  0x10   :  { %24 = dma.hbm_to_vmem [thread:$0]  %s1063_s1, 16384, %s19_s19, [#allocation3], %s934_s28, %s934_s28, %s935_s29  }
  0x11   :  { %931 = dma.done.wait [#allocation3], 16384  }
  0x12   :  { %932 = vsyncadd [#allocation3], 4294950912  ;;  %v58_v0 = vld [vmem:[#allocation2 + $0x80] sm:$0xff]  ;;  %v59_v1 = vld [vmem:[#allocation2 + $0x88] sm:$0xff]  ;;  %vm937_vm0 = vmmov 0  }
  0x13   :  { %v42_v2 = vld [vmem:[#allocation2] sm:$0xff]  ;;  %v751_v3 = vpack.c.bf16 %v59_v1, %v58_v0  ;;  %v43_v4 = vld [vmem:[#allocation2 + $0x8] sm:$0xff]  ;;  %v60_v11 = vld [vmem:[#allocation2 + $0x90] sm:$0xff] }
  0x14   :  { %v90_v5 = vld [vmem:[#allocation2 + $0x180] sm:$0xff]  ;;  %v91_v6 = vld [vmem:[#allocation2 + $0x188] sm:$0xff]  ;;  %v753_v7 = vpack.c.bf16 %v43_v4, %v42_v2  ;;  %v61_v13 = vld [vmem:[#allocation2 + $0x98] sm:$0xff] }
  0x15   :  { %v783_v8 = vpack.c.bf16 %v91_v6, %v90_v5  ;;  %v74_v9 = vld [vmem:[#allocation2 + $0x100] sm:$0xff]  ;;  %v75_v10 = vld [vmem:[#allocation2 + $0x108] sm:$0xff]  ;;  %752 = vmatprep.subr.bf16.mxu0 %v751_v3  ;;  %v44_v14 = vld [vmem:[#allocation2 + $0x10] sm:$0xff]  ;;  %v755_v16 = vpack.c.bf16 %v61_v13, %v60_v11 }
  0x16   :  { %v785_v12 = vpack.c.bf16 %v75_v10, %v74_v9  ;;  %v45_v15 = vld [vmem:[#allocation2 + $0x18] sm:$0xff]  ;;  %754 = vmatpush3.bf16.msra.mxu0 %v753_v7  ;;  %v92_v18 = vld [vmem:[#allocation2 + $0x190] sm:$0xff]  ;;  %v62_v23 = vld [vmem:[#allocation2 + $0xa0] sm:$0xff] }
  0x17   :  { %784 = vmatprep.subr.bf16.mxu1 %v783_v8  ;;  %v757_v17 = vpack.c.bf16 %v45_v15, %v44_v14  ;;  %v93_v19 = vld [vmem:[#allocation2 + $0x198] sm:$0xff]  ;;  %v76_v20 = vld [vmem:[#allocation2 + $0x110] sm:$0xff]  ;;  %v63_v24 = vld [vmem:[#allocation2 + $0xa8] sm:$0xff]  ;;  %756 = vmatprep.subr.bf16.mxu0 %v755_v16 }
  0x18   :  { %786 = vmatpush3.bf16.msra.mxu1 %v785_v12  ;;  %v787_v21 = vpack.c.bf16 %v93_v19, %v92_v18  ;;  %v77_v22 = vld [vmem:[#allocation2 + $0x118] sm:$0xff]  ;;  %v759_v26 = vpack.c.bf16 %v63_v24, %v62_v23  ;;  %v46_v27 = vld [vmem:[#allocation2 + $0x20] sm:$0xff]  ;;  %v47_v28 = vld [vmem:[#allocation2 + $0x28] sm:$0xff] }
  0x19   :  { %v789_v25 = vpack.c.bf16 %v77_v22, %v76_v20  ;;  %v94_v29 = vld [vmem:[#allocation2 + $0x1a0] sm:$0xff]  ;;  %v95_v30 = vld [vmem:[#allocation2 + $0x1a8] sm:$0xff]  ;;  %v761_v33 = vpack.c.bf16 %v47_v28, %v46_v27  ;;  %v64_v35 = vld [vmem:[#allocation2 + $0xb0] sm:$0xff] }
  0x1a   :  { %788 = vmatprep.subr.bf16.mxu1 %v787_v21  ;;  %v78_v31 = vld [vmem:[#allocation2 + $0x120] sm:$0xff]  ;;  %v79_v32 = vld [vmem:[#allocation2 + $0x128] sm:$0xff]  ;;  %758 = vmatpush3.bf16.msra.mxu0 %v757_v17  ;;  %v791_v34 = vpack.c.bf16 %v95_v30, %v94_v29  ;;  %v65_v36 = vld [vmem:[#allocation2 + $0xb8] sm:$0xff] }
  0x1b   :  { %v48_v37 = vld [vmem:[#allocation2 + $0x30] sm:$0xff]  ;;  %760 = vmatprep.subr.bf16.mxu0 %v759_v26  ;;  %v793_v38 = vpack.c.bf16 %v79_v32, %v78_v31  ;;  %v763_v39 = vpack.c.bf16 %v65_v36, %v64_v35  ;;  %v49_v40 = vld [vmem:[#allocation2 + $0x38] sm:$0xff]  ;;  %v66_v46 = vld [vmem:[#allocation2 + $0xc0] sm:$0xff] }
  0x1c   :  { %790 = vmatpush3.bf16.msra.mxu1 %v789_v25  ;;  %v96_v41 = vld [vmem:[#allocation2 + $0x1b0] sm:$0xff]  ;;  %v97_v42 = vld [vmem:[#allocation2 + $0x1b8] sm:$0xff]  ;;  %v67_v47 = vld [vmem:[#allocation2 + $0xc8] sm:$0xff]  ;;  %v765_v48 = vpack.c.bf16 %v49_v40, %v48_v37 }
  0x1d   :  { %792 = vmatprep.subr.bf16.mxu1 %v791_v34  ;;  %v795_v43 = vpack.c.bf16 %v97_v42, %v96_v41  ;;  %v80_v44 = vld [vmem:[#allocation2 + $0x130] sm:$0xff]  ;;  %v81_v45 = vld [vmem:[#allocation2 + $0x138] sm:$0xff]  ;;  %v98_v49 = vld [vmem:[#allocation2 + $0x1c0] sm:$0xff]  ;;  %v767_v52 = vpack.c.bf16 %v67_v47, %v66_v46 }
  0x1e   :  { %762 = vmatpush3.bf16.msra.mxu0 %v761_v33  ;;  %v99_v50 = vld [vmem:[#allocation2 + $0x1c8] sm:$0xff]  ;;  %v797_v51 = vpack.c.bf16 %v81_v45, %v80_v44  ;;  %v50_v53 = vld [vmem:[#allocation2 + $0x40] sm:$0xff]  ;;  %v68_v58 = vld [vmem:[#allocation2 + $0xd0] sm:$0xff] }
  0x1f   :  { %764 = vmatprep.subr.bf16.mxu0 %v763_v39  ;;  %v51_v54 = vld [vmem:[#allocation2 + $0x48] sm:$0xff]  ;;  %v82_v55 = vld [vmem:[#allocation2 + $0x140] sm:$0xff]  ;;  %v799_v56 = vpack.c.bf16 %v99_v50, %v98_v49  ;;  %v69_v59 = vld [vmem:[#allocation2 + $0xd8] sm:$0xff] }
  0x20   :  { %794 = vmatpush3.bf16.msra.mxu1 %v793_v38  ;;  %v83_v57 = vld [vmem:[#allocation2 + $0x148] sm:$0xff]  ;;  %v100_v60 = vld [vmem:[#allocation2 + $0x1d0] sm:$0xff]  ;;  %v101_v61 = vld [vmem:[#allocation2 + $0x1d8] sm:$0xff]  ;;  %v769_v62 = vpack.c.bf16 %v51_v54, %v50_v53  ;;  %v771_v0 = vpack.c.bf16 %v69_v59, %v68_v58 }
  0x21   :  { %796 = vmatprep.subr.bf16.mxu1 %v795_v43  ;;  %v801_v63 = vpack.c.bf16 %v83_v57, %v82_v55  ;;  %v52_v1 = vld [vmem:[#allocation2 + $0x50] sm:$0xff]  ;;  %v53_v2 = vld [vmem:[#allocation2 + $0x58] sm:$0xff]  ;;  %v803_v4 = vpack.c.bf16 %v101_v61, %v100_v60  ;;  %v70_v6 = vld [vmem:[#allocation2 + $0xe0] sm:$0xff] }
  0x22   :  { %766 = vmatpush3.bf16.msra.mxu0 %v765_v48  ;;  %v84_v3 = vld [vmem:[#allocation2 + $0x150] sm:$0xff]  ;;  %v85_v5 = vld [vmem:[#allocation2 + $0x158] sm:$0xff]  ;;  %v71_v7 = vld [vmem:[#allocation2 + $0xe8] sm:$0xff]  ;;  %v773_v10 = vpack.c.bf16 %v53_v2, %v52_v1 }
  0x23   :  { %768 = vmatprep.subr.bf16.mxu0 %v767_v52  ;;  %v102_v8 = vld [vmem:[#allocation2 + $0x1e0] sm:$0xff]  ;;  %v103_v9 = vld [vmem:[#allocation2 + $0x1e8] sm:$0xff]  ;;  %v805_v13 = vpack.c.bf16 %v85_v5, %v84_v3  ;;  %v775_v14 = vpack.c.bf16 %v71_v7, %v70_v6  ;;  %v72_v19 = vld [vmem:[#allocation2 + $0xf0] sm:$0xff] }
  0x24   :  { %798 = vmatpush3.bf16.msra.mxu1 %v797_v51  ;;  %v54_v11 = vld [vmem:[#allocation2 + $0x60] sm:$0xff]  ;;  %v55_v12 = vld [vmem:[#allocation2 + $0x68] sm:$0xff]  ;;  %v807_v18 = vpack.c.bf16 %v103_v9, %v102_v8  ;;  %v73_v20 = vld [vmem:[#allocation2 + $0xf8] sm:$0xff] }
  0x25   :  { %800 = vmatprep.subr.bf16.mxu1 %v799_v56  ;;  %v86_v15 = vld [vmem:[#allocation2 + $0x160] sm:$0xff]  ;;  %v87_v16 = vld [vmem:[#allocation2 + $0x168] sm:$0xff]  ;;  %v37_v21 = vld [vmem:[%s1062_s0 + $0x18] sm:$0xff]  ;;  %v777_v24 = vpack.c.bf16 %v55_v12, %v54_v11  ;;  %v779_v26 = vpack.c.bf16 %v73_v20, %v72_v19 }
  0x26   :  { %770 = vmatpush3.bf16.msra.mxu0 %v769_v62  ;;  %v35_v17 = vld [vmem:[%s1062_s0 + $0x8] sm:$0xff]  ;;  %v104_v22 = vld [vmem:[#allocation2 + $0x1f0] sm:$0xff]  ;;  %v105_v23 = vld [vmem:[#allocation2 + $0x1f8] sm:$0xff]  ;;  %311 = vmatprep.mubr.f32.mxu1 %v37_v21  ;;  %v809_v25 = vpack.c.bf16 %v87_v16, %v86_v15 }
  0x27   :  { %772 = vmatprep.subr.bf16.mxu0 %v771_v0  ;;  %241 = vmatprep.mubr.f32.mxu0 %v35_v17  ;;  %v56_v27 = vld [vmem:[#allocation2 + $0x70] sm:$0xff]  ;;  %v57_v28 = vld [vmem:[#allocation2 + $0x78] sm:$0xff]  ;;  %v811_v30 = vpack.c.bf16 %v105_v23, %v104_v22  ;;  %v122_v32 = vld [vmem:[#allocation2 + $0x280] sm:$0xff] }
  0x28   :  { %802 = vmatpush3.bf16.msra.mxu1 %v801_v63  ;;  %v88_v29 = vld [vmem:[#allocation2 + $0x170] sm:$0xff]  ;;  %v89_v31 = vld [vmem:[#allocation2 + $0x178] sm:$0xff]  ;;  %v123_v33 = vld [vmem:[#allocation2 + $0x288] sm:$0xff]  ;;  %v781_v36 = vpack.c.bf16 %v57_v28, %v56_v27 }
  0x29   :  { %804 = vmatprep.subr.bf16.mxu1 %v803_v4  ;;  %v154_v34 = vld [vmem:[#allocation2 + $0x380] sm:$0xff]  ;;  %v155_v35 = vld [vmem:[#allocation2 + $0x388] sm:$0xff]  ;;  %v813_v37 = vpack.c.bf16 %v89_v31, %v88_v29  ;;  %v815_v38 = vpack.c.bf16 %v123_v33, %v122_v32  ;;  %v124_v44 = vld [vmem:[#allocation2 + $0x290] sm:$0xff] }
  0x2a   :  { %774 = vmatpush3.bf16.msra.mxu0 %v773_v10  ;;  %v106_v39 = vld [vmem:[#allocation2 + $0x200] sm:$0xff]  ;;  %v107_v40 = vld [vmem:[#allocation2 + $0x208] sm:$0xff]  ;;  %v847_v42 = vpack.c.bf16 %v155_v35, %v154_v34  ;;  %v125_v45 = vld [vmem:[#allocation2 + $0x298] sm:$0xff] }
  0x2b   :  { %776 = vmatprep.subr.bf16.mxu0 %v775_v14  ;;  %v138_v41 = vld [vmem:[#allocation2 + $0x300] sm:$0xff]  ;;  %v139_v43 = vld [vmem:[#allocation2 + $0x308] sm:$0xff]  ;;  %v156_v46 = vld [vmem:[#allocation2 + $0x390] sm:$0xff]  ;;  %v817_v49 = vpack.c.bf16 %v107_v40, %v106_v39  ;;  %v819_v52 = vpack.c.bf16 %v125_v45, %v124_v44 }
  0x2c   :  { %806 = vmatpush3.bf16.msra.mxu1 %v805_v13  ;;  %v157_v47 = vld [vmem:[#allocation2 + $0x398] sm:$0xff]  ;;  %v34_v48 = vld [vmem:[%s1062_s0] sm:$0xff]  ;;  %v36_v50 = vld [vmem:[%s1062_s0 + $0x10] sm:$0xff]  ;;  %v849_v51 = vpack.c.bf16 %v139_v43, %v138_v41 }
  0x2d   :  { %808 = vmatprep.subr.bf16.mxu1 %v807_v18  ;;  %v108_v53 = vld [vmem:[#allocation2 + $0x210] sm:$0xff]  ;;  %v109_v54 = vld [vmem:[#allocation2 + $0x218] sm:$0xff]  ;;  %v851_v56 = vpack.c.bf16 %v157_v47, %v156_v46  ;;  %v126_v58 = vld [vmem:[#allocation2 + $0x2a0] sm:$0xff] }
  0x2e   :  { %778 = vmatpush3.bf16.msra.mxu0 %v777_v24  ;;  %v140_v55 = vld [vmem:[#allocation2 + $0x310] sm:$0xff]  ;;  %v141_v57 = vld [vmem:[#allocation2 + $0x318] sm:$0xff]  ;;  %v127_v59 = vld [vmem:[#allocation2 + $0x2a8] sm:$0xff]  ;;  %v821_v62 = vpack.c.bf16 %v109_v54, %v108_v53 }
  0x2f   :  { %780 = vmatprep.subr.bf16.mxu0 %v779_v26  ;;  %v158_v60 = vld [vmem:[#allocation2 + $0x3a0] sm:$0xff]  ;;  %v159_v61 = vld [vmem:[#allocation2 + $0x3a8] sm:$0xff]  ;;  %v853_v63 = vpack.c.bf16 %v141_v57, %v140_v55  ;;  %v823_v0 = vpack.c.bf16 %v127_v59, %v126_v58  ;;  %v128_v6 = vld [vmem:[#allocation2 + $0x2b0] sm:$0xff] }
  0x30   :  { %810 = vmatpush3.bf16.msra.mxu1 %v809_v25  ;;  %v110_v1 = vld [vmem:[#allocation2 + $0x220] sm:$0xff]  ;;  %v111_v2 = vld [vmem:[#allocation2 + $0x228] sm:$0xff]  ;;  %v855_v4 = vpack.c.bf16 %v159_v61, %v158_v60  ;;  %v129_v7 = vld [vmem:[#allocation2 + $0x2b8] sm:$0xff] }
  0x31   :  { %812 = vmatprep.subr.bf16.mxu1 %v811_v30  ;;  %v142_v3 = vld [vmem:[#allocation2 + $0x320] sm:$0xff]  ;;  %v143_v5 = vld [vmem:[#allocation2 + $0x328] sm:$0xff]  ;;  %v160_v8 = vld [vmem:[#allocation2 + $0x3b0] sm:$0xff]  ;;  %v825_v10 = vpack.c.bf16 %v111_v2, %v110_v1  ;;  %v827_v12 = vpack.c.bf16 %v129_v7, %v128_v6 }
  0x32   :  { %782 = vmatpush3.bf16.msra.mxu0 %v781_v36  ;;  %v161_v9 = vld [vmem:[#allocation2 + $0x3b8] sm:$0xff]  ;;  %v857_v11 = vpack.c.bf16 %v143_v5, %v142_v3  ;;  %v112_v13 = vld [vmem:[#allocation2 + $0x230] sm:$0xff]  ;;  %v130_v18 = vld [vmem:[#allocation2 + $0x2c0] sm:$0xff] }
  0x33   :  { %816 = vmatprep.subr.bf16.mxu0 %v815_v38  ;;  %v113_v14 = vld [vmem:[#allocation2 + $0x238] sm:$0xff]  ;;  %v144_v15 = vld [vmem:[#allocation2 + $0x330] sm:$0xff]  ;;  %v859_v16 = vpack.c.bf16 %v161_v9, %v160_v8  ;;  %v131_v19 = vld [vmem:[#allocation2 + $0x2c8] sm:$0xff] }
  0x34   :  { %814 = vmatpush3.bf16.msra.mxu1 %v813_v37  ;;  %v145_v17 = vld [vmem:[#allocation2 + $0x338] sm:$0xff]  ;;  %v162_v20 = vld [vmem:[#allocation2 + $0x3c0] sm:$0xff]  ;;  %v163_v21 = vld [vmem:[#allocation2 + $0x3c8] sm:$0xff]  ;;  %v829_v22 = vpack.c.bf16 %v113_v14, %v112_v13  ;;  %v831_v26 = vpack.c.bf16 %v131_v19, %v130_v18 }
  0x35   :  { %848 = vmatprep.subr.bf16.mxu1 %v847_v42  ;;  %242 = vmatmul.mubr.f32.vlgmr.msra.gmra.mrb[0].mxu0 %v34_v48  ;;  %v39_v23 = vld [vmem:[%s1062_s0 + $0x28] sm:$0xff]  ;;  %v41_v24 = vld [vmem:[%s1062_s0 + $0x38] sm:$0xff]  ;;  %v861_v25 = vpack.c.bf16 %v145_v17, %v144_v15  ;;  %v114_v27 = vld [vmem:[#allocation2 + $0x240] sm:$0xff]  ;;  %v863_v30 = vpack.c.bf16 %v163_v21, %v162_v20 }
  0x36   :  { %818 = vmatpush3.bf16.msra.mxu0 %v817_v49  ;;  %v115_v28 = vld [vmem:[#allocation2 + $0x248] sm:$0xff]  ;;  %v146_v29 = vld [vmem:[#allocation2 + $0x340] sm:$0xff]  ;;  %v132_v32 = vld [vmem:[#allocation2 + $0x2d0] sm:$0xff]  ;;  %381 = vmatprep.mubr.f32.mxu0 %v39_v23 }
  0x37   :  { %312 = vmatmul.mubr.f32.vlgmr.msra.gmra.mrb[0].mxu1 %v36_v50  ;;  %820 = vmatprep.subr.bf16.mxu0 %v819_v52  ;;  %v147_v31 = vld [vmem:[#allocation2 + $0x348] sm:$0xff]  ;;  %v133_v33 = vld [vmem:[#allocation2 + $0x2d8] sm:$0xff]  ;;  %v164_v34 = vld [vmem:[#allocation2 + $0x3d0] sm:$0xff]  ;;  %v833_v36 = vpack.c.bf16 %v115_v28, %v114_v27 }
  0x38   :  { %850 = vmatpush3.bf16.msra.mxu1 %v849_v51  ;;  %v165_v35 = vld [vmem:[#allocation2 + $0x3d8] sm:$0xff]  ;;  %451 = vmatprep.mubr.f32.mxu1 %v41_v24  ;;  %v865_v37 = vpack.c.bf16 %v147_v31, %v146_v29  ;;  %v835_v38 = vpack.c.bf16 %v133_v33, %v132_v32  ;;  %v116_v39 = vld [vmem:[#allocation2 + $0x250] sm:$0xff]  ;;  %v134_v44 = vld [vmem:[#allocation2 + $0x2e0] sm:$0xff]  ;;  %v938_v33 = vmov 0.0  }
  0x39   :  { %852 = vmatprep.subr.bf16.mxu1 %v851_v56  ;;  %v117_v40 = vld [vmem:[#allocation2 + $0x258] sm:$0xff]  ;;  %v148_v41 = vld [vmem:[#allocation2 + $0x350] sm:$0xff]  ;;  %v867_v42 = vpack.c.bf16 %v165_v35, %v164_v34  ;;  %v135_v45 = vld [vmem:[#allocation2 + $0x2e8] sm:$0xff] }
  0x3a   :  { %822 = vmatpush3.bf16.msra.mxu0 %v821_v62  ;;  %v149_v43 = vld [vmem:[#allocation2 + $0x358] sm:$0xff]  ;;  %v166_v46 = vld [vmem:[#allocation2 + $0x3e0] sm:$0xff]  ;;  %v167_v47 = vld [vmem:[#allocation2 + $0x3e8] sm:$0xff]  ;;  %v837_v48 = vpack.c.bf16 %v117_v40, %v116_v39  ;;  %v839_v50 = vpack.c.bf16 %v135_v45, %v134_v44 }
  0x3b   :  { %824 = vmatprep.subr.bf16.mxu0 %v823_v0  ;;  %v869_v49 = vpack.c.bf16 %v149_v43, %v148_v41  ;;  %v118_v51 = vld [vmem:[#allocation2 + $0x260] sm:$0xff]  ;;  %v119_v52 = vld [vmem:[#allocation2 + $0x268] sm:$0xff]  ;;  %v871_v54 = vpack.c.bf16 %v167_v47, %v166_v46  ;;  %v136_v56 = vld [vmem:[#allocation2 + $0x2f0] sm:$0xff] }
  0x3c   :  { %854 = vmatpush3.bf16.msra.mxu1 %v853_v63  ;;  %v150_v53 = vld [vmem:[#allocation2 + $0x360] sm:$0xff]  ;;  %v151_v55 = vld [vmem:[#allocation2 + $0x368] sm:$0xff]  ;;  %v137_v57 = vld [vmem:[#allocation2 + $0x2f8] sm:$0xff]  ;;  %v841_v60 = vpack.c.bf16 %v119_v52, %v118_v51 }
  0x3d   :  { %856 = vmatprep.subr.bf16.mxu1 %v855_v4  ;;  %v168_v58 = vld [vmem:[#allocation2 + $0x3f0] sm:$0xff]  ;;  %v169_v59 = vld [vmem:[#allocation2 + $0x3f8] sm:$0xff]  ;;  %v873_v61 = vpack.c.bf16 %v151_v55, %v150_v53  ;;  %v843_v62 = vpack.c.bf16 %v137_v57, %v136_v56  ;;  %v38_v6 = vld [vmem:[%s1062_s0 + $0x20] sm:$0xff] }
  0x3e   :  { %826 = vmatpush3.bf16.msra.mxu0 %v825_v10  ;;  %v120_v63 = vld [vmem:[#allocation2 + $0x270] sm:$0xff]  ;;  %v121_v0 = vld [vmem:[#allocation2 + $0x278] sm:$0xff]  ;;  %v875_v1 = vpack.c.bf16 %v169_v59, %v168_v58  ;;  %v458_v8 = vld [vmem:[%s1065_s3] sm:$0xff] }
  0x3f   :  { %828 = vmatprep.subr.bf16.mxu0 %v827_v12  ;;  %v152_v2 = vld [vmem:[#allocation2 + $0x370] sm:$0xff]  ;;  %v153_v3 = vld [vmem:[#allocation2 + $0x378] sm:$0xff]  ;;  %v845_v4 = vpack.c.bf16 %v121_v0, %v120_v63  ;;  %v459_v9 = vld [vmem:[%s1065_s3 + $0x8] sm:$0xff] }
  0x40   :  { %858 = vmatpush3.bf16.msra.mxu1 %v857_v11  ;;  %v877_v5 = vpack.c.bf16 %v153_v3, %v152_v2  ;;  %v40_v7 = vld [vmem:[%s1062_s0 + $0x30] sm:$0xff]  ;;  %v936_v11 = vmov 0.0|0.0   ;;  %v880_v12 = vpack.c.bf16 %v459_v9, %v458_v8  ;;  %v461_v13 = vld [vmem:[%s1065_s3 + $0x18] sm:$0xff]  ;;  %v462_v15 = vld [vmem:[%s1065_s3 + $0x20] sm:$0xff] }
  0x41   :  { %860 = vmatprep.subr.bf16.mxu1 %v859_v16  ;;  %v460_v10 = vld [vmem:[%s1065_s3 + $0x10] sm:$0xff]  ;;  %v463_v16 = vld [vmem:[%s1065_s3 + $0x28] sm:$0xff]  ;;  %v465_v19 = vld [vmem:[%s1065_s3 + $0x38] sm:$0xff] }
  0x42   :  { %830 = vmatpush3.bf16.msra.mxu0 %v829_v22  ;;  %v883_v14 = vpack.c.bf16 %v461_v13, %v460_v10  ;;  %v886_v17 = vpack.c.bf16 %v463_v16, %v462_v15  ;;  %v464_v18 = vld [vmem:[%s1065_s3 + $0x30] sm:$0xff]  ;;  %v466_v21 = vld [vmem:[%s1065_s3 + $0x40] sm:$0xff]  ;;  %v467_v22 = vld [vmem:[%s1065_s3 + $0x48] sm:$0xff] }
  0x43   :  { %832 = vmatprep.subr.bf16.mxu0 %v831_v26  ;;  %v889_v20 = vpack.c.bf16 %v465_v19, %v464_v18  ;;  %v892_v23 = vpack.c.bf16 %v467_v22, %v466_v21  ;;  %v468_v24 = vld [vmem:[%s1065_s3 + $0x50] sm:$0xff]  ;;  %v470_v27 = vld [vmem:[%s1065_s3 + $0x60] sm:$0xff]  ;;  %v471_v28 = vld [vmem:[%s1065_s3 + $0x68] sm:$0xff] }
  0x44   :  { %862 = vmatpush3.bf16.msra.mxu1 %v861_v25  ;;  %v469_v25 = vld [vmem:[%s1065_s3 + $0x58] sm:$0xff]  ;;  %v898_v29 = vpack.c.bf16 %v471_v28, %v470_v27  ;;  %v557_v35 = vld [vmem:[%s1064_s2] ss:$0 sm:$0xff] }
  0x45   :  { %864 = vmatprep.subr.bf16.mxu1 %v863_v30  ;;  %v895_v26 = vpack.c.bf16 %v469_v25, %v468_v24  ;;  %v472_v30 = vld [vmem:[%s1065_s3 + $0x70] sm:$0xff]  ;;  %v473_v31 = vld [vmem:[%s1065_s3 + $0x78] sm:$0xff]  ;;  %v558_v52 = vld [vmem:[%s1066_s4] ss:$0 sm:$0xff] }
  0x46   :  { %834 = vmatpush3.bf16.msra.mxu0 %v833_v36  ;;  %v901_v32 = vpack.c.bf16 %v473_v31, %v472_v30 }
  0x47   :  { %836 = vmatprep.subr.bf16.mxu0 %v835_v38 }
  0x48   :  { %866 = vmatpush3.bf16.msra.mxu1 %v865_v37 }
  0x49   :  { %868 = vmatprep.subr.bf16.mxu1 %v867_v42 }
  0x4a   :  { %838 = vmatpush3.bf16.msra.mxu0 %v837_v48 }
  0x4b   :  { %840 = vmatprep.subr.bf16.mxu0 %v839_v50 }
  0x4c   :  { %870 = vmatpush3.bf16.msra.mxu1 %v869_v49 }
  0x4d   :  { %872 = vmatprep.subr.bf16.mxu1 %v871_v54 }
  0x4e   :  { %842 = vmatpush3.bf16.msra.mxu0 %v841_v60 }
  0x4f   :  { %844 = vmatprep.subr.bf16.mxu0 %v843_v62 }
  0x50   :  { %874 = vmatpush3.bf16.msra.mxu1 %v873_v61 }
  0x51   :  { %876 = vmatprep.subr.bf16.mxu1 %v875_v1 }
  0x52   :  { %846 = vmatpush3.bf16.msra.mxu0 %v845_v4 }
  0x53   :  { %879 = vmatprep.subr.bf16.mxu0 %v936_v11 }
  0x54   :  { %878 = vmatpush3.bf16.msra.mxu1 %v877_v5 }
  0x55   :  { %382 = vmatmul.mubr.f32.vlgmr.msra.gmra.mrb[2].mxu0 %v38_v6 }
  0x56   :  { %881 = vmatpush3.bf16.msra.mxu0 %v880_v12  ;;  %748 = vmatprep.mubr.msk.f32.mxu0 %vm937_vm0, %v938_v33 }
  0x57   :  { %452 = vmatmul.mubr.f32.vlgmr.msra.gmra.mrb[2].mxu1 %v40_v7  ;;  %882 = vmatprep.subr.bf16.mxu0 %v936_v11 }
  0x5a   :  { %884 = vmatpush3.bf16.msra.mxu0 %v883_v14 }
  0x5b   :  { %885 = vmatprep.subr.bf16.mxu0 %v936_v11 }
  0x5e   :  { %887 = vmatpush3.bf16.msra.mxu0 %v886_v17 }
  0x5f   :  { %888 = vmatprep.subr.bf16.mxu0 %v936_v11 }
  0x62   :  { %890 = vmatpush3.bf16.msra.mxu0 %v889_v20 }
  0x63   :  { %891 = vmatprep.subr.bf16.mxu0 %v936_v11 }
  0x66   :  { %893 = vmatpush3.bf16.msra.mxu0 %v892_v23 }
  0x67   :  { %894 = vmatprep.subr.bf16.mxu0 %v936_v11 }
  0x6a   :  { %896 = vmatpush3.bf16.msra.mxu0 %v895_v26 }
  0x6b   :  { %897 = vmatprep.subr.bf16.mxu0 %v936_v11 }
  0x6e   :  { %899 = vmatpush3.bf16.msra.mxu0 %v898_v29 }
  0x6f   :  { %900 = vmatprep.subr.bf16.mxu0 %v936_v11 }
  0x72   :  { %902 = vmatpush3.bf16.msra.mxu0 %v901_v32 }
 0x108   :  { %v591_v34 = vpop.f32.mrb[0].mxu0 }
 0x109   :  { %v592_v36 = vpop.f32.mrb[1].mxu0 }
 0x10a   :  { %v626_v37 = vpop.f32.mrb[0].mxu1  ;;  %v593_v38 = vadd.f32 %v592_v36, %v591_v34 }
 0x10b   :  { %v627_v39 = vpop.f32.mrb[1].mxu1 }
 0x10c   :  { %v628_v40 = vadd.f32 %v627_v39, %v626_v37  ;;  %v244_v41 = vadd.f32 %v593_v38, %v557_v35 }
 0x10e   :  { %v314_v42 = vadd.f32 %v628_v40, %v244_v41 }
 0x128   :  { %v661_v43 = vpop.f32.mrb[2].mxu0 }
 0x129   :  { %v662_v44 = vpop.f32.mrb[3].mxu0 }
 0x12a   :  { %v696_v45 = vpop.f32.mrb[2].mxu1  ;;  %v663_v46 = vadd.f32 %v662_v44, %v661_v43 }
 0x12b   :  { %v697_v47 = vpop.f32.mrb[3].mxu1 }
 0x12c   :  { %v698_v48 = vadd.f32 %v697_v47, %v696_v45  ;;  %v384_v49 = vadd.f32 %v663_v46, %v314_v42 }
 0x12e   :  { %v454_v50 = vadd.f32 %v698_v48, %v384_v49 }
 0x130   :  { %v457_v51 = vmax.f32 %v454_v50, 0.0 }
 0x132   :  { %749 = vmatmul.mubr.f32.vlgmr.msra.gmra.mrb[4].mxu0 %v457_v51 }
 0x205   :  { %v547_v53 = vpop.f32.mrb[4].mxu0 }
 0x206   :  { %v548_v54 = vadd.f32 %v558_v52, %v547_v53  ;;  %v750_v55 = vpop.f32.mrb[5].mxu0 }
 0x208   :  { %551 = vst [vmem:[%s1067_s5] sm:$0xff] %v548_v54 }
 0x209   :  { %556 = vsyncpa [#allocation3], 1 }

</bundles_post_ra>
